<compile_context>
chip_gen: v7x
topology: tpu7x:2x2x1
jax: 0.10.0
libtpu: 0.0.40
codegen_flags: <defaults>
</compile_context>

<pallas_src>
import functools

import jax
import jax.numpy as jnp
from jax.experimental import pallas as pl
from jax.experimental.pallas import tpu as pltpu


def se_basic_block_kernel(x_ref, w1_ref, w2_ref, bias_ref, fc1_ref, fc2_ref,
                          pool_ref, exp_ref, o_ref, *, L):
    # x_ref    : (C, N) f32, N = block_batch*L, samples concatenated along lanes
    # w1_ref   : (C, 3*Cin) im2col conv1 weight, BN1 scale folded   (compute dtype)
    # w2_ref   : (C, 3*C)   im2col conv2 weight, BN2 scale folded   (compute dtype)
    # bias_ref : (C, 2) f32  column 0 = bn1 bias, column 1 = bn2 bias
    # fc1_ref  : (hid, C), fc2_ref : (C, hid)  SE weights            (compute dtype)
    # pool_ref : (N, Bblk) per-sample mean matrix (entries 1/L)      (compute dtype)
    # exp_ref  : (Bblk, N) per-sample gate expansion matrix (1.0)    (compute dtype)
    # o_ref    : (C, N) output
    cdt = w1_ref.dtype
    N = x_ref.shape[-1]
    x = x_ref[...]                                              # (C, N) f32 residual

    pos = jax.lax.broadcasted_iota(jnp.int32, x.shape, 1) % L
    not_first = pos != 0                                        # has a left neighbor in-sample
    not_last = pos != (L - 1)                                   # has a right neighbor in-sample

    def im2col(a):
        # Three shifted copies (x[t-1], x[t], x[t+1]) stacked along sublanes -> (3C, N).
        left = jnp.where(not_first, pltpu.roll(a, shift=1, axis=1), 0.0)
        right = jnp.where(not_last, pltpu.roll(a, shift=N - 1, axis=1), 0.0)
        return jnp.concatenate([left, a, right], axis=0).astype(cdt)

    # conv1 (BN1 scale folded into weights) -> +bias -> ReLU
    out = jnp.dot(w1_ref[...], im2col(x), preferred_element_type=jnp.float32)
    out = jnp.maximum(out + bias_ref[:, 0:1], 0.0)

    # conv2 (BN2 scale folded into weights) -> +bias
    out = jnp.dot(w2_ref[...], im2col(out), preferred_element_type=jnp.float32)
    out = out + bias_ref[:, 1:2]

    # SE: per-sample mean (1/L folded into pool matrix) -> FC -> ReLU -> FC -> sigmoid
    pooled = jnp.dot(out.astype(cdt), pool_ref[...],
                     preferred_element_type=jnp.float32)                         # (C, Bblk)
    h = jnp.maximum(jnp.dot(fc1_ref[...], pooled.astype(cdt),
                            preferred_element_type=jnp.float32), 0.0)            # (hid, Bblk)
    g = jax.nn.sigmoid(jnp.dot(fc2_ref[...], h.astype(cdt),
                               preferred_element_type=jnp.float32))              # (C, Bblk)
    gate = jnp.dot(g.astype(cdt), exp_ref[...],
                   preferred_element_type=jnp.float32)                           # (C, N)

    # channel gate, residual add, final ReLU — lane-dense store
    o_ref[...] = jnp.maximum(out * gate + x, 0.0).astype(o_ref.dtype)


def se_basic_block(x, params, *, eps=1e-5, block_batch=None, compute_dtype=jnp.bfloat16):
    """x: (B, C, L) float32 -> (B, C, L) float32 (inference-mode BatchNorm)."""
    B, C, L = x.shape
    w1, w2 = params["w1"], params["w2"]
    Cin = w1.shape[1]
    fc1, fc2 = params["fc1"], params["fc2"]
    hid = fc1.shape[0]

    if block_batch is None:
        block_batch = B
    assert B % block_batch == 0, "batch must be divisible by block_batch"
    n_blocks = B // block_batch
    N = block_batch * L

    # Fold BatchNorm (running stats) into the conv weights + one packed bias array.
    s1 = params["bn1_gamma"] / jnp.sqrt(params["bn1_var"] + eps)
    b1 = params["bn1_beta"] - params["bn1_mean"] * s1
    s2 = params["bn2_gamma"] / jnp.sqrt(params["bn2_var"] + eps)
    b2 = params["bn2_beta"] - params["bn2_mean"] * s2

    w1f = w1 * s1[:, None, None]
    w2f = w2 * s2[:, None, None]
    # im2col weight layout: [tap0 | tap1 | tap2] along the contraction axis.
    W1 = jnp.concatenate([w1f[:, :, 0], w1f[:, :, 1], w1f[:, :, 2]], axis=1).astype(compute_dtype)
    W2 = jnp.concatenate([w2f[:, :, 0], w2f[:, :, 1], w2f[:, :, 2]], axis=1).astype(compute_dtype)
    bias = jnp.stack([b1, b2], axis=1).astype(jnp.float32)            # (C, 2)
    fc1c = fc1.astype(compute_dtype)
    fc2c = fc2.astype(compute_dtype)

    # Per-sample pooling (mean, 1/L folded) and gate-expansion matrices — constants.
    j = jnp.arange(N)
    b_idx = jnp.arange(block_batch)
    same = (j[:, None] // L) == b_idx[None, :]
    pool_mat = (same.astype(jnp.float32) / L).astype(compute_dtype)   # (N, Bblk)
    exp_mat = same.T.astype(compute_dtype)                            # (Bblk, N)

    # Lane-dense activation slab: (B, C, L) -> (C, B*L).
    x2 = jnp.transpose(x, (1, 0, 2)).reshape(C, B * L).astype(jnp.float32)

    def full_spec(shape):
        n = len(shape)
        return pl.BlockSpec(shape, lambda i, _n=n: (0,) * _n)

    out2 = pl.pallas_call(
        functools.partial(se_basic_block_kernel, L=L),
        out_shape=jax.ShapeDtypeStruct((C, B * L), jnp.float32),
        grid=(n_blocks,),
        in_specs=[
            pl.BlockSpec((C, N), lambda i: (0, i)),   # activations (lane-dense)
            full_spec((C, 3 * Cin)),                  # W1 (BN1 folded)
            full_spec((C, 3 * C)),                    # W2 (BN2 folded)
            full_spec((C, 2)),                        # packed BN biases
            full_spec((hid, C)),                      # SE fc1
            full_spec((C, hid)),                      # SE fc2
            full_spec((N, block_batch)),              # pooling matrix
            full_spec((block_batch, N)),              # gate expansion matrix
        ],
        out_specs=pl.BlockSpec((C, N), lambda i: (0, i)),
        compiler_params=pltpu.CompilerParams(dimension_semantics=("parallel",)),
    )(x2, W1, W2, bias, fc1c, fc2c, pool_mat, exp_mat)

    # (C, B*L) -> (B, C, L)
    return jnp.transpose(out2.reshape(C, B, L), (1, 0, 2)).astype(x.dtype)


def ref_forward(x, params, eps=1e-5):
    """Pure-JAX reference mirroring the PyTorch forward (BN in eval mode)."""
    def conv3(x, w):
        xp = jnp.pad(x, ((0, 0), (0, 0), (1, 1)))
        L = x.shape[-1]
        return sum(jnp.einsum("oi,bil->bol", w[:, :, k], xp[:, :, k:k + L]) for k in range(3))

    def bn(a, g, b, m, v):
        return (a - m[None, :, None]) / jnp.sqrt(v[None, :, None] + eps) * g[None, :, None] + b[None, :, None]

    out = jax.nn.relu(bn(conv3(x, params["w1"]), params["bn1_gamma"], params["bn1_beta"],
                         params["bn1_mean"], params["bn1_var"]))
    out = bn(conv3(out, params["w2"]), params["bn2_gamma"], params["bn2_beta"],
             params["bn2_mean"], params["bn2_var"])
    y = jnp.mean(out, axis=2)
    h = jax.nn.relu(y @ params["fc1"].T)
    g = jax.nn.sigmoid(h @ params["fc2"].T)
    out = out * g[:, :, None]
    return jax.nn.relu(out + x)


if __name__ == "__main__":
    B, C, L = 16, 32, 16          # inplanes == planes == 32, seq length 16
    reduction = 16
    hid = C // reduction          # 2
    Bblk = 8                      # 2 grid steps, Bblk*L = 128 lanes per step

    key = jax.random.PRNGKey(0)
    ks = jax.random.split(key, 13)
    params = {
        "w1": 0.1 * jax.random.normal(ks[0], (C, C, 3), jnp.float32),
        "w2": 0.1 * jax.random.normal(ks[1], (C, C, 3), jnp.float32),
        "bn1_gamma": 1.0 + 0.1 * jax.random.normal(ks[2], (C,), jnp.float32),
        "bn1_beta": 0.1 * jax.random.normal(ks[3], (C,), jnp.float32),
        "bn1_mean": 0.05 * jax.random.normal(ks[4], (C,), jnp.float32),
        "bn1_var": jnp.abs(1.0 + 0.1 * jax.random.normal(ks[5], (C,), jnp.float32)),
        "bn2_gamma": 1.0 + 0.1 * jax.random.normal(ks[6], (C,), jnp.float32),
        "bn2_beta": 0.1 * jax.random.normal(ks[7], (C,), jnp.float32),
        "bn2_mean": 0.05 * jax.random.normal(ks[8], (C,), jnp.float32),
        "bn2_var": jnp.abs(1.0 + 0.1 * jax.random.normal(ks[9], (C,), jnp.float32)),
        "fc1": 0.1 * jax.random.normal(ks[10], (hid, C), jnp.float32),
        "fc2": 0.1 * jax.random.normal(ks[11], (C, hid), jnp.float32),
    }
    x = jax.random.normal(ks[12], (B, C, L), jnp.float32)

    ref = ref_forward(x, params)

    # 1) f32-MXU path: validates kernel structure tightly against the reference.
    out_f32 = jax.block_until_ready(
        se_basic_block(x, params, block_batch=Bblk, compute_dtype=jnp.float32))
    assert out_f32.shape == (B, C, L)
    assert jnp.allclose(out_f32, ref, rtol=1e-4, atol=1e-4), "f32 kernel mismatch vs reference"

    # 2) bf16-MXU path (native matmul dtype on v6e/v7x), f32 accumulation + f32 epilogue.
    out_bf16 = jax.block_until_ready(
        se_basic_block(x, params, block_batch=Bblk, compute_dtype=jnp.bfloat16))
    assert out_bf16.shape == (B, C, L)
    assert jnp.allclose(out_bf16, ref, rtol=2e-2, atol=2e-2), "bf16 kernel mismatch vs reference"

    print("KERNEL_OK")
</pallas_src>

<mosaic_0001>
module attributes {stable_mosaic.version = 11 : i64} {
  func.func @se_basic_block_kernel(%arg0: i32, %arg1: memref<32x128xf32, #tpu.memory_space<vmem>>, %arg2: memref<32x96xf32, #tpu.memory_space<vmem>>, %arg3: memref<32x96xf32, #tpu.memory_space<vmem>>, %arg4: memref<32x2xf32, #tpu.memory_space<vmem>>, %arg5: memref<2x32xf32, #tpu.memory_space<vmem>>, %arg6: memref<32x2xf32, #tpu.memory_space<vmem>>, %arg7: memref<128x8xf32, #tpu.memory_space<vmem>>, %arg8: memref<8x128xf32, #tpu.memory_space<vmem>>, %arg9: memref<32x128xf32, #tpu.memory_space<vmem>>) attributes {dimension_semantics = [#tpu.dimension_semantics<parallel>], iteration_bounds = array<i64: 2>, scalar_prefetch = 0 : i64, scratch_operands = 0 : i64, tpu.core_type = #tpu.core_type<tc>, window_params = [{transform_indices = @transform_0, window_bounds = array<i64: 32, 128>}, {pipeline_mode = #tpu.pipeline_mode<synchronous>, transform_indices = @transform_1, window_bounds = array<i64: 32, 96>}, {pipeline_mode = #tpu.pipeline_mode<synchronous>, transform_indices = @transform_2, window_bounds = array<i64: 32, 96>}, {pipeline_mode = #tpu.pipeline_mode<synchronous>, transform_indices = @transform_3, window_bounds = array<i64: 32, 2>}, {pipeline_mode = #tpu.pipeline_mode<synchronous>, transform_indices = @transform_4, window_bounds = array<i64: 2, 32>}, {pipeline_mode = #tpu.pipeline_mode<synchronous>, transform_indices = @transform_5, window_bounds = array<i64: 32, 2>}, {pipeline_mode = #tpu.pipeline_mode<synchronous>, transform_indices = @transform_6, window_bounds = array<i64: 128, 8>}, {pipeline_mode = #tpu.pipeline_mode<synchronous>, transform_indices = @transform_7, window_bounds = array<i64: 8, 128>}, {transform_indices = @transform_8, window_bounds = array<i64: 32, 128>}]} {
    %c0 = arith.constant 0 : index
    %c0_0 = arith.constant 0 : index
    %0 = vector.load %arg1[%c0, %c0_0] : memref<32x128xf32, #tpu.memory_space<vmem>>, vector<32x128xf32>
    %1 = tpu.iota {dimensions = array<i32: 1>} : vector<32x128xi32>
    %c16_i32 = arith.constant 16 : i32
    %c0_i32 = arith.constant 0 : i32
    %2 = arith.cmpi eq, %c16_i32, %c0_i32 : i32
    %c1_i32 = arith.constant 1 : i32
    %3 = arith.select %2, %c1_i32, %c16_i32 : i32
    %4 = vector.broadcast %3 : i32 to vector<32x128xi32>
    %5 = arith.remsi %1, %4 : vector<32x128xi32>
    %c0_i32_1 = arith.constant 0 : i32
    %6 = vector.broadcast %c0_i32_1 : i32 to vector<32x128xi32>
    %7 = arith.cmpi ne, %5, %6 : vector<32x128xi32>
    %c0_i32_2 = arith.constant 0 : i32
    %8 = vector.broadcast %c0_i32_2 : i32 to vector<32x128xi32>
    %9 = arith.cmpi slt, %5, %8 : vector<32x128xi32>
    %c0_i32_3 = arith.constant 0 : i32
    %10 = arith.cmpi slt, %3, %c0_i32_3 : i32
    %11 = vector.broadcast %10 : i1 to vector<32x128xi1>
    %12 = vector.broadcast %11 : vector<32x128xi1> to vector<32x128xi1>
    %13 = arith.xori %9, %12 : vector<32x128xi1>
    %14 = arith.andi %13, %7 : vector<32x128xi1>
    %15 = vector.broadcast %3 : i32 to vector<32x128xi32>
    %16 = arith.addi %5, %15 : vector<32x128xi32>
    %17 = arith.select %14, %16, %5 : vector<32x128xi1>, vector<32x128xi32>
    %c0_i32_4 = arith.constant 0 : i32
    %18 = vector.broadcast %c0_i32_4 : i32 to vector<32x128xi32>
    %19 = arith.cmpi ne, %17, %18 : vector<32x128xi32>
    %c15_i32 = arith.constant 15 : i32
    %20 = vector.broadcast %c15_i32 : i32 to vector<32x128xi32>
    %21 = arith.cmpi ne, %17, %20 : vector<32x128xi32>
    %c0_5 = arith.constant 0 : index
    %c0_6 = arith.constant 0 : index
    %22 = vector.load %arg2[%c0_5, %c0_6] : memref<32x96xf32, #tpu.memory_space<vmem>>, vector<32x96xf32>
    %c1_i32_7 = arith.constant 1 : i32
    %23 = tpu.dynamic_rotate %0 by %c1_i32_7 dim 1 : vector<32x128xf32>, i32 -> vector<32x128xf32>
    %cst = arith.constant 0.000000e+00 : f32
    %24 = vector.broadcast %cst : f32 to vector<32x128xf32>
    %25 = arith.select %19, %23, %24 : vector<32x128xi1>, vector<32x128xf32>
    %c127_i32 = arith.constant 127 : i32
    %26 = tpu.dynamic_rotate %0 by %c127_i32 dim 1 : vector<32x128xf32>, i32 -> vector<32x128xf32>
    %cst_8 = arith.constant 0.000000e+00 : f32
    %27 = vector.broadcast %cst_8 : f32 to vector<32x128xf32>
    %28 = arith.select %21, %26, %27 : vector<32x128xi1>, vector<32x128xf32>
    %29 = tpu.concatenate %25, %0, %28 in 0 : vector<32x128xf32>, vector<32x128xf32>, vector<32x128xf32> -> vector<96x128xf32>
    %cst_9 = arith.constant dense<0.000000e+00> : vector<32x128xf32>
    %30 = tpu.matmul %22, %29, %cst_9 {dimension_numbers = #tpu.dot_dimension_numbers<[1], [0], [0], [1], [0, 0, 1, 1], [], []>} : vector<32x96xf32>, vector<96x128xf32>, vector<32x128xf32> -> vector<32x128xf32>
    %c0_10 = arith.constant 0 : index
    %c0_11 = arith.constant 0 : index
    %31 = vector.load %arg4[%c0_10, %c0_11] : memref<32x2xf32, #tpu.memory_space<vmem>>, vector<32x1xf32>
    %32 = vector.broadcast %31 : vector<32x1xf32> to vector<32x128xf32>
    %33 = arith.addf %30, %32 : vector<32x128xf32>
    %cst_12 = arith.constant 0.000000e+00 : f32
    %34 = vector.broadcast %cst_12 : f32 to vector<32x128xf32>
    %35 = arith.maximumf %33, %34 : vector<32x128xf32>
    %c0_13 = arith.constant 0 : index
    %c0_14 = arith.constant 0 : index
    %36 = vector.load %arg3[%c0_13, %c0_14] : memref<32x96xf32, #tpu.memory_space<vmem>>, vector<32x96xf32>
    %c1_i32_15 = arith.constant 1 : i32
    %37 = tpu.dynamic_rotate %35 by %c1_i32_15 dim 1 : vector<32x128xf32>, i32 -> vector<32x128xf32>
    %cst_16 = arith.constant 0.000000e+00 : f32
    %38 = vector.broadcast %cst_16 : f32 to vector<32x128xf32>
    %39 = arith.select %19, %37, %38 : vector<32x128xi1>, vector<32x128xf32>
    %c127_i32_17 = arith.constant 127 : i32
    %40 = tpu.dynamic_rotate %35 by %c127_i32_17 dim 1 : vector<32x128xf32>, i32 -> vector<32x128xf32>
    %cst_18 = arith.constant 0.000000e+00 : f32
    %41 = vector.broadcast %cst_18 : f32 to vector<32x128xf32>
    %42 = arith.select %21, %40, %41 : vector<32x128xi1>, vector<32x128xf32>
    %43 = tpu.concatenate %39, %35, %42 in 0 : vector<32x128xf32>, vector<32x128xf32>, vector<32x128xf32> -> vector<96x128xf32>
    %cst_19 = arith.constant dense<0.000000e+00> : vector<32x128xf32>
    %44 = tpu.matmul %36, %43, %cst_19 {dimension_numbers = #tpu.dot_dimension_numbers<[1], [0], [0], [1], [0, 0, 1, 1], [], []>} : vector<32x96xf32>, vector<96x128xf32>, vector<32x128xf32> -> vector<32x128xf32>
    %c0_20 = arith.constant 0 : index
    %c1 = arith.constant 1 : index
    %45 = vector.load %arg4[%c0_20, %c1] : memref<32x2xf32, #tpu.memory_space<vmem>>, vector<32x1xf32>
    %46 = vector.broadcast %45 : vector<32x1xf32> to vector<32x128xf32>
    %47 = arith.addf %44, %46 : vector<32x128xf32>
    %c0_21 = arith.constant 0 : index
    %c0_22 = arith.constant 0 : index
    %48 = vector.load %arg7[%c0_21, %c0_22] : memref<128x8xf32, #tpu.memory_space<vmem>>, vector<128x8xf32>
    %cst_23 = arith.constant dense<0.000000e+00> : vector<32x8xf32>
    %49 = tpu.matmul %47, %48, %cst_23 {dimension_numbers = #tpu.dot_dimension_numbers<[1], [0], [0], [1], [0, 0, 1, 1], [], []>} : vector<32x128xf32>, vector<128x8xf32>, vector<32x8xf32> -> vector<32x8xf32>
    %c0_24 = arith.constant 0 : index
    %c0_25 = arith.constant 0 : index
    %50 = vector.load %arg5[%c0_24, %c0_25] : memref<2x32xf32, #tpu.memory_space<vmem>>, vector<2x32xf32>
    %cst_26 = arith.constant dense<0.000000e+00> : vector<2x8xf32>
    %51 = tpu.matmul %50, %49, %cst_26 {dimension_numbers = #tpu.dot_dimension_numbers<[1], [0], [0], [1], [0, 0, 1, 1], [], []>} : vector<2x32xf32>, vector<32x8xf32>, vector<2x8xf32> -> vector<2x8xf32>
    %cst_27 = arith.constant 0.000000e+00 : f32
    %52 = vector.broadcast %cst_27 : f32 to vector<2x8xf32>
    %53 = arith.maximumf %51, %52 : vector<2x8xf32>
    %c0_28 = arith.constant 0 : index
    %c0_29 = arith.constant 0 : index
    %54 = vector.load %arg6[%c0_28, %c0_29] : memref<32x2xf32, #tpu.memory_space<vmem>>, vector<32x2xf32>
    %cst_30 = arith.constant dense<0.000000e+00> : vector<32x8xf32>
    %55 = tpu.matmul %54, %53, %cst_30 {dimension_numbers = #tpu.dot_dimension_numbers<[1], [0], [0], [1], [0, 0, 1, 1], [], []>} : vector<32x2xf32>, vector<2x8xf32>, vector<32x8xf32> -> vector<32x8xf32>
    %56 = arith.negf %55 : vector<32x8xf32>
    %57 = math.exp %56 : vector<32x8xf32>
    %cst_31 = arith.constant 1.000000e+00 : f32
    %58 = vector.broadcast %cst_31 : f32 to vector<32x8xf32>
    %59 = arith.addf %58, %57 : vector<32x8xf32>
    %60 = arith.divf %58, %59 : vector<32x8xf32>
    %c0_32 = arith.constant 0 : index
    %c0_33 = arith.constant 0 : index
    %61 = vector.load %arg8[%c0_32, %c0_33] : memref<8x128xf32, #tpu.memory_space<vmem>>, vector<8x128xf32>
    %cst_34 = arith.constant dense<0.000000e+00> : vector<32x128xf32>
    %62 = tpu.matmul %60, %61, %cst_34 {dimension_numbers = #tpu.dot_dimension_numbers<[1], [0], [0], [1], [0, 0, 1, 1], [], []>} : vector<32x8xf32>, vector<8x128xf32>, vector<32x128xf32> -> vector<32x128xf32>
    %63 = arith.mulf %47, %62 : vector<32x128xf32>
    %64 = arith.addf %63, %0 : vector<32x128xf32>
    %cst_35 = arith.constant 0.000000e+00 : f32
    %65 = vector.broadcast %cst_35 : f32 to vector<32x128xf32>
    %66 = arith.maximumf %64, %65 : vector<32x128xf32>
    %c0_36 = arith.constant 0 : index
    %c0_37 = arith.constant 0 : index
    %67 = vector.load %arg9[%c0_36, %c0_37] : memref<32x128xf32, #tpu.memory_space<vmem>>, vector<32x128xf32>
    tpu.vector_store %arg9[%c0_36, %c0_37], %66 {strides = array<i32>} : memref<32x128xf32, #tpu.memory_space<vmem>>, vector<32x128xf32>,
    return
  }
  func.func @transform_0(%arg0: i32) -> (i32, i32) {
    %c0_i32 = arith.constant 0 : i32
    %c0_i32_0 = arith.constant 0 : i32
    return %c0_i32, %arg0 : i32, i32
  }
  func.func @transform_1(%arg0: i32) -> (i32, i32) {
    %c0_i32 = arith.constant 0 : i32
    %c0_i32_0 = arith.constant 0 : i32
    %c0_i32_1 = arith.constant 0 : i32
    return %c0_i32, %c0_i32_0 : i32, i32
  }
  func.func @transform_2(%arg0: i32) -> (i32, i32) {
    %c0_i32 = arith.constant 0 : i32
    %c0_i32_0 = arith.constant 0 : i32
    %c0_i32_1 = arith.constant 0 : i32
    return %c0_i32, %c0_i32_0 : i32, i32
  }
  func.func @transform_3(%arg0: i32) -> (i32, i32) {
    %c0_i32 = arith.constant 0 : i32
    %c0_i32_0 = arith.constant 0 : i32
    %c0_i32_1 = arith.constant 0 : i32
    return %c0_i32, %c0_i32_0 : i32, i32
  }
  func.func @transform_4(%arg0: i32) -> (i32, i32) {
    %c0_i32 = arith.constant 0 : i32
    %c0_i32_0 = arith.constant 0 : i32
    %c0_i32_1 = arith.constant 0 : i32
    return %c0_i32, %c0_i32_0 : i32, i32
  }
  func.func @transform_5(%arg0: i32) -> (i32, i32) {
    %c0_i32 = arith.constant 0 : i32
    %c0_i32_0 = arith.constant 0 : i32
    %c0_i32_1 = arith.constant 0 : i32
    return %c0_i32, %c0_i32_0 : i32, i32
  }
  func.func @transform_6(%arg0: i32) -> (i32, i32) {
    %c0_i32 = arith.constant 0 : i32
    %c0_i32_0 = arith.constant 0 : i32
    %c0_i32_1 = arith.constant 0 : i32
    return %c0_i32, %c0_i32_0 : i32, i32
  }
  func.func @transform_7(%arg0: i32) -> (i32, i32) {
    %c0_i32 = arith.constant 0 : i32
    %c0_i32_0 = arith.constant 0 : i32
    %c0_i32_1 = arith.constant 0 : i32
    return %c0_i32, %c0_i32_0 : i32, i32
  }
  func.func @transform_8(%arg0: i32) -> (i32, i32) {
    %c0_i32 = arith.constant 0 : i32
    %c0_i32_0 = arith.constant 0 : i32
    return %c0_i32, %arg0 : i32, i32
  }
}

</mosaic_0001>

<bundles_post_ra>
// kernel: tpu_custom_call.1
= control target key start
LH: loop header
LB: loop body
LE: loop exit
PB: predicated region body
PF: predicated region fallthrough
CT: control target
= control target key end

     0   :  { %13 = vsyncpa [#allocation4], 0  ;;  %s2075_s0 = inlined_call_operand.vmem [shape: f32[32,256], index: 0, kind: input, shape index: {}]   ;;  %s2076_s1 = inlined_call_operand.vmem [shape: f32[32,96], index: 1, kind: input, shape index: {}]   ;;  %s2077_s2 = inlined_call_operand.vmem [shape: f32[32,96], index: 2, kind: input, shape index: {}]   ;;  %s2078_s3 = inlined_call_operand.vmem [shape: f32[32,2], index: 3, kind: input, shape index: {}]   ;;  %s2079_s4 = inlined_call_operand.vmem [shape: f32[2,32], index: 4, kind: input, shape index: {}]   ;;  %s2080_s5 = inlined_call_operand.vmem [shape: f32[32,2], index: 5, kind: input, shape index: {}]   ;;  %s2081_s6 = inlined_call_operand.vmem [shape: f32[128,8], index: 6, kind: input, shape index: {}]   ;;  %s2082_s7 = inlined_call_operand.vmem [shape: f32[8,128], index: 7, kind: input, shape index: {}]   ;;  %s2083_s8 = inlined_call_operand.hbm [shape: f32[32,256], index: 8, kind: output, shape index: {}]  }
   0x1   :  { %15 = vsyncpa [#allocation4 + $0x1], 0  ;;  %s1741_s27 = smov 0   ;;  %s1743_s28 = smov 0  }
   0x2   :  { %s1745_s29 = smov 0   ;;  %s1747_s30 = smov 0  }
   0x3 LB: > { %s1167_s9 = sadd.s32 4294967295, %s1683_s30   ;;  %s1168_s10 = sadd.s32 4294967294, %s1683_s30   ;;  %s1683_s30 = sphi %s1747_s30, %s2093_s30   ;;  %s1679_s29 = sphi %s1745_s29, %s2092_s29   ;;  %s1675_s28 = sphi %s1743_s28, %s2091_s28   ;;  %s1671_s27 = sphi %s1741_s27, %s2090_s27  }
   0x4   : > { %s1764_s11 = sadd.s32 1, %s1683_s30   ;;  %s28_s12 = sadd.s32 1, %s1679_s29 }
   0x5   : > { %s25_s13 = ssub.s32 %s1683_s30, %s1764_s11  ;;  %p35_p0 = scmp.ne.s32.totalorder %s1679_s29, %s1675_s28 }
   0x6   : > { %p26_p1 = scmp.eq.s32.totalorder %s25_s13, 0  ;;  %p36_p2 = scmp.eq.s32.totalorder %s1683_s30, 0 }
   0x7   : > { %p212_p3 = scmp.eq.s32.totalorder %s1167_s9, 1  ;;  %p217_p4 = scmp.ne.s32.totalorder %s1675_s28, %s1671_s27 }
   0x8   : > { %s1777_s14 = scalar_select %p26_p1, %s1679_s29, %s28_s12  }
   0x9   : > { %p37_p5 = por %p36_p2, %p35_p0  ;;  %p1779_p6 = por %p212_p3, %p35_p0 }
   0xa   : > { %p218_p7 = scmp.eq.s32.totalorder %s1168_s10, 1  ;;  %p1170_p9 = scmp.ge.s32.totalorder %s1683_s30, 2 }
   0xc   : > { %p1783_p8 = por %p218_p7, %p217_p4  ;;  %255 = sbr.rel (%p1170_p9) target bundleno = 26 (0x1a), region = 44 }
  0x13   : > { %258 = sbr.rel (!%p37_p5) target bundleno = 26 (0x1a), region = 48  ;;  %s260_s17 = sand.u32 (%p37_p5), 1, %s1679_s29  }
  0x14   : > { %s1172_s18 = sshll.u32 (%p37_p5), %s1683_s30, 3  ;;  %s1171_s19 = sshll.u32 (%p37_p5), %s260_s17, 5 }
  0x15   : > { %s264_s22 = scalar_lea.vmem (%p37_p5), %s2075_s0, %s1172_s18  ;;  %s262_s23 = scalar_lea.vmem (%p37_p5), [#allocation2], %s1171_s19 }
  0x16   : > { %v298_v0 = vld [vmem:[%s264_s22] sm:$0xff] (%p37_p5)  ;;  %v300_v1 = vld [vmem:[%s264_s22 + $0x10] sm:$0xff] (%p37_p5) }
  0x17   : > { %v302_v2 = vld [vmem:[%s264_s22 + $0x20] sm:$0xff] (%p37_p5)  ;;  %299 = vst [vmem:[%s262_s23] sm:$0xff] (%p37_p5), %v298_v0  ;;  %301 = vst [vmem:[%s262_s23 + $0x8] sm:$0xff] (%p37_p5), %v300_v1  ;;  %v304_v3 = vld [vmem:[%s264_s22 + $0x30] sm:$0xff] (%p37_p5) }
  0x18   : > { %303 = vst [vmem:[%s262_s23 + $0x10] sm:$0xff] (%p37_p5), %v302_v2  ;;  %305 = vst [vmem:[%s262_s23 + $0x18] sm:$0xff] (%p37_p5), %v304_v3 }
  0x1a PF: > { %p1173_p10 = scmp.ge.s32.totalorder %s1683_s30, 1  ;;  %p310_p11 = scmp.lt.s32.totalorder %s1683_s30, 3 }
  0x1c   : > { %p311_p12 = pnand %p1173_p10, %p310_p11 }
  0x1d   : > { %s317_s24 = sand.u32 (!%p311_p12), 1, %s1675_s28   ;;  %s1685_s10 = smov (!%p311_p12), 1   ;;  %v370_v10 = vld [vmem:[%s2076_s1] sm:$0xff] (!%p311_p12)  ;;  %vm422_vm0 = vcmask (!%p311_p12), 785408   ;;  %v1826_v11 = vld [vmem:[%s2078_s3 + $0x8] sm:$0xff] (!%p311_p12)  ;;  %v1687_v13 = vmov (!%p311_p12), 0   ;;  %v354_v16 = vlaneseq (!%p311_p12) }
  0x1e   : > { %314 = sbr.rel (%p311_p12) target bundleno = 1673 (0x689), region = 86  ;;  %s1800_s25 = sshll.u32 (!%p311_p12), %s317_s24, 5  ;;  %1309 = vmatprep.mubr.msk.f32.mxu0 (!%p311_p12), %vm422_vm0, %v370_v10  ;;  %v1831_v12 = vld [vmem:[%s2078_s3] sm:$0xff] (!%p311_p12)  ;;  %1582 = vset.pattern.permute.xlu1 (!%p311_p12), %v1687_v13  ;;  %v1838_v14 = vld [vmem:[%s2078_s3 + $0x10] sm:$0xff] (!%p311_p12)  ;;  %v1843_v15 = vld [vmem:[%s2078_s3 + $0x18] sm:$0xff] (!%p311_p12)  ;;  %v1688_v2 = vmov (!%p311_p12), 1  }
  0x1f   : > { %s319_s26 = scalar_lea.vmem (!%p311_p12), [#allocation2], %s1800_s25  ;;  %s1686_s12 = smov (!%p311_p12), 127   ;;  %1581 = vset.pattern.permute.xlu0 (!%p311_p12), %v1687_v13  ;;  %v355_v17 = vand.u32 (!%p311_p12), 127, %v354_v16  ;;  %v371_v39 = vld [vmem:[%s2076_s1 + $0x8] sm:$0xff] (!%p311_p12)  ;;  %v372_v40 = vld [vmem:[%s2076_s1 + $0x10] sm:$0xff] (!%p311_p12)  ;;  %v373_v41 = vld [vmem:[%s2076_s1 + $0x18] sm:$0xff] (!%p311_p12) }
  0x20   : > { %v1803_v4 = vld [vmem:[%s319_s26] sm:$0xff] (!%p311_p12)  ;;  %v1805_v5 = vld [vmem:[%s319_s26 + $0x8] sm:$0xff] (!%p311_p12)  ;;  %v1807_v6 = vld [vmem:[%s319_s26 + $0x10] sm:$0xff] (!%p311_p12)  ;;  %vm1690_vm5 = vmmov (!%p311_p12), 0   ;;  %vm767_vm6 = vcmask (!%p311_p12), 261120   ;;  %vm846_vm7 = vcmask (!%p311_p12), 15360  }
  0x21   : > { %v1561_v7 = vpack.i.bf16 (!%p311_p12), %v1805_v5, %v1803_v4  ;;  %v1811_v8 = vld [vmem:[%s319_s26 + $0x18] sm:$0xff] (!%p311_p12)  ;;  %v360_v18 = vand.u32 (!%p311_p12), 15, %v355_v17  ;;  %v1422_v29 = vpack.c.bf16 (!%p311_p12), %v1805_v5, %v1803_v4  ;;  %v524_v62 = vld [vmem:[%s2077_s2] sm:$0xff] (!%p311_p12)  ;;  %v666_v0 = vld [vmem:[%s2081_s6 + $0x8] sm:$0xff] (!%p311_p12)  ;;  %vm859_vm8 = vcmask (!%p311_p12), 1041408   ;;  %s1215_s22 = sshll.u32 (!%p311_p12), %s1167_s9, 7 }
  0x22   : > { %v1566_v9 = vpack.i.bf16 (!%p311_p12), %v1811_v8, %v1807_v6  ;;  %v1426_v32 = vpack.c.bf16 (!%p311_p12), %v1811_v8, %v1807_v6  ;;  %1339 = vmatprep.mubr.msk.f32.mxu1 (!%p311_p12), %vm422_vm0, %v524_v62  ;;  %v665_v63 = vld [vmem:[%s2081_s6] sm:$0xff] (!%p311_p12)  ;;  %v667_v1 = vld [vmem:[%s2081_s6 + $0x10] sm:$0xff] (!%p311_p12)  ;;  %v670_v13 = vld [vmem:[%s2081_s6 + $0x28] sm:$0xff] (!%p311_p12)  ;;  %vm973_vm9 = vcmask (!%p311_p12), 64512   ;;  %s2029_s26 = scalar_lea.hbm (!%p311_p12), %s2083_s8, %s1215_s22  ;;  %s2033_s9 = scalar_lea.sflag (!%p311_p12), [#allocation4], %s317_s24 }
  0x23   : > { %1562 = vrot.lane.b32.xlu0 (!%p311_p12), %v1561_v7, %s1685_s10  ;;  %1572 = vrot.lane.b32.xlu1 (!%p311_p12), %v1561_v7, %s1686_s12  ;;  %vm368_vm1 = vcmp.ne.s32.totalorder (!%p311_p12), %v360_v18, 0  ;;  %vm369_vm3 = vcmp.ne.s32.totalorder (!%p311_p12), %v360_v18, 15  ;;  %v1474_v3 = vpack.c.bf16 (!%p311_p12), %v666_v0, %v665_v63  ;;  %v668_v7 = vld [vmem:[%s2081_s6 + $0x18] sm:$0xff] (!%p311_p12)  ;;  %v669_v10 = vld [vmem:[%s2081_s6 + $0x20] sm:$0xff] (!%p311_p12)  ;;  %s1692_s17 = smov (!%p311_p12), [#allocation3]  }
  0x24   : > { %vm1847_vm2 = vmpackc.low (!%p311_p12), %vm368_vm1, %vm368_vm1  ;;  %v1482_v16 = vpack.c.bf16 (!%p311_p12), %v670_v13, %v669_v10  ;;  %v673_v18 = vld [vmem:[%s2081_s6 + $0x40] sm:$0xff] (!%p311_p12)  ;;  %v525_v22 = vld [vmem:[%s2077_s2 + $0x8] sm:$0xff] (!%p311_p12)  ;;  %s1625_s18 = sshll.u32 (!%p311_p12), %s1692_s17, 4  ;;  %s1626_s18 = int_to_ptr.vmem [resolvable:$false] %s1625_s18 }
  0x25   : > { %vm1863_vm4 = vmpackc.low %vm369_vm3, %vm369_vm3  ;;  %v679_v37 = vld [vmem:[%s2081_s6 + $0x70] sm:$0xff]  ;;  %s1627_s19 = scalar_lea.vmem %s1626_s18, 1024 }
  0x27   : > { %1567 = vrot.lane.b32.xlu0 %v1566_v9, %s1685_s10  ;;  %1577 = vrot.lane.b32.xlu1 %v1566_v9, %s1686_s12  ;;  %v1478_v9 = vpack.c.bf16 %v668_v7, %v667_v1  ;;  %v842_v7 = vld [vmem:[%s2080_s5] sm:$0xff] }
  0x2b   : > { %409 = vperm.xlu1 %1582, %v1826_v11   ;;  %404 = vperm.xlu0 %1581, %v1831_v12  }
  0x2f   : > { %414 = vperm.xlu1 %1582, %v1838_v14   ;;  %419 = vperm.xlu0 %1581, %v1843_v15  }
  0x33   : > { %1603 = vset.pattern.permute.xlu1 %v1688_v2  ;;  %1604 = vset.pattern.permute.xlu0 %v1688_v2 }
  0x95   : > { %v1563_v19 = vpop.permute.xlu0 %1562  ;;  %v1573_v27 = vpop.permute.xlu1 %1572 }
  0x96   : > { %v1565_v20 = vunpack.i.h.bf16 %v1563_v19  ;;  %v1564_v21 = vunpack.i.l.bf16 %v1563_v19  ;;  %v1575_v30 = vunpack.i.h.bf16 %v1573_v27  ;;  %v1574_v31 = vunpack.i.l.bf16 %v1573_v27 }
  0x98   : > { %v1410_v23 = vpack.c.bf16 %v1565_v20, %v1564_v21  ;;  %v1430_v34 = vpack.c.bf16 %v1575_v30, %v1574_v31  ;;  %v675_v20 = vld [vmem:[%s2081_s6 + $0x50] sm:$0xff]  ;;  %v676_v21 = vld [vmem:[%s2081_s6 + $0x58] sm:$0xff] }
  0x99   : > { %v1568_v24 = vpop.permute.xlu0 %1567  ;;  %v1578_v33 = vpop.permute.xlu1 %1577 }
  0x9a   : > { %v1570_v25 = vunpack.i.h.bf16 %v1568_v24  ;;  %v1569_v26 = vunpack.i.l.bf16 %v1568_v24  ;;  %1412 = vmatprep.subr.msk.bf16.mxu0 %vm1847_vm2, %v1410_v23  ;;  %v1580_v35 = vunpack.i.h.bf16 %v1578_v33  ;;  %v1579_v36 = vunpack.i.l.bf16 %v1578_v33  ;;  %v678_v24 = vld [vmem:[%s2081_s6 + $0x68] sm:$0xff] }
  0x9b   : > { %1415 = vmatpush3.bf16.msk.msra.mxu0 %vm1847_vm2, %v1410_v23  ;;  %v677_v23 = vld [vmem:[%s2081_s6 + $0x60] sm:$0xff] }
  0x9c   : > { %v1416_v28 = vpack.c.bf16 %v1570_v25, %v1569_v26  ;;  %v1436_v38 = vpack.c.bf16 %v1580_v35, %v1579_v36  ;;  %v1498_v25 = vpack.c.bf16 %v678_v24, %v677_v23 }
  0x9e   : > { %1418 = vmatprep.subr.msk.bf16.mxu0 %vm1847_vm2, %v1416_v28 }
  0x9f   : > { %1421 = vmatpush3.bf16.msk.msra.mxu0 %vm1847_vm2, %v1416_v28 }
  0xa0   : > { %1423 = vmatprep.subr.bf16.mxu0 %v1422_v29 }
  0xa3   : > { %1425 = vmatpush3.bf16.msra.mxu0 %v1422_v29 }
  0xa4   : > { %1427 = vmatprep.subr.bf16.mxu0 %v1426_v32 }
  0xa7   : > { %1429 = vmatpush3.bf16.msra.mxu0 %v1426_v32 }
  0xa8   : > { %1432 = vmatprep.subr.msk.bf16.mxu0 %vm1863_vm4, %v1430_v34 }
  0xaa   : > { %v405_v42 = vpop.permute.xlu0 %404  ;;  %v410_v43 = vpop.permute.xlu1 %409 }
  0xab   : > { %1435 = vmatpush3.bf16.msk.msra.mxu0 %vm1863_vm4, %v1430_v34 }
  0xac   : > { %1438 = vmatprep.subr.msk.bf16.mxu0 %vm1863_vm4, %v1436_v38 }
  0xae   : > { %v420_v49 = vpop.permute.xlu0 %419  ;;  %v415_v52 = vpop.permute.xlu1 %414 }
  0xaf   : > { %1441 = vmatpush3.bf16.msk.msra.mxu0 %vm1863_vm4, %v1436_v38 }
  0xb0   : > { %1475 = vmatprep.subr.bf16.mxu0 %v1474_v3 }
  0xb2   : > { %1310 = vmatmul.mubr.msk.f32.vlgmr.msra.gmra.mrb[0].mxu0 %vm422_vm0, %v371_v39 }
  0xb3   : > { %1312 = vmatprep.mubr.msk.f32.mxu0 %vm422_vm0, %v372_v40  ;;  %1477 = vmatpush3.bf16.msra.mxu0 %v1474_v3  ;;  %v766_v3 = vld [vmem:[%s2079_s4] sm:$0x3] }
  0xb4   : > { %1479 = vmatprep.subr.bf16.mxu0 %v1478_v9 }
  0xb6   : > { %1313 = vmatmul.mubr.msk.f32.gmra.mrb[2].mxu0 %vm422_vm0, %v373_v41 }
  0xb7   : > { %1481 = vmatpush3.bf16.msra.mxu0 %v1478_v9 }
  0xb8   : > { %1483 = vmatprep.subr.bf16.mxu0 %v1482_v16 }
  0xbb   : > { %1485 = vmatpush3.bf16.msra.mxu0 %v1482_v16  ;;  %v843_v16 = vld [vmem:[%s2080_s5 + $0x8] sm:$0xff] }
 0x185   : > { %v1311_v44 = vpop.f32.mrb[0].mxu0 }
 0x186   : > { %v507_v45 = vadd.f32 %v1311_v44, %v410_v43  ;;  %v501_v46 = vpop.f32.mrb[1].mxu0  ;;  %v526_v43 = vld [vmem:[%s2077_s2 + $0x10] sm:$0xff]  ;;  %v527_v44 = vld [vmem:[%s2077_s2 + $0x18] sm:$0xff] }
 0x187   : > { %v502_v47 = vadd.f32 %v501_v46, %v405_v42 }
 0x188   : > { %v521_v48 = vmax.f32 %v507_v45, 0.0  ;;  %v680_v45 = vld [vmem:[%s2081_s6 + $0x78] sm:$0xff] }
 0x189   : > { %v520_v50 = vmax.f32 %v502_v47, 0.0  ;;  %v1314_v51 = vpop.f32.mrb[2].mxu0  ;;  %v1502_v46 = vpack.c.bf16 %v680_v45, %v679_v37 }
 0x18a   : > { %v517_v53 = vadd.f32 %v1314_v51, %v420_v49  ;;  %v511_v54 = vpop.f32.mrb[3].mxu0 }
 0x18b   : > { %v512_v55 = vadd.f32 %v511_v54, %v415_v52  ;;  %v1583_v56 = vpack.i.bf16 %v521_v48, %v520_v50  ;;  %v1887_v57 = vpack.c.bf16 %v521_v48, %v520_v50 }
 0x18c   : > { %v523_v58 = vmax.f32 %v517_v53, 0.0 }
 0x18d   : > { %v522_v59 = vmax.f32 %v512_v55, 0.0  ;;  %1584 = vrot.lane.b32.xlu1 %v1583_v56, %s1685_s10 }
 0x18f   : > { %v1588_v60 = vpack.i.bf16 %v523_v58, %v522_v59  ;;  %v1890_v61 = vpack.c.bf16 %v523_v58, %v522_v59  ;;  %v1689_v59 = vmov 0.0|0.0  }
 0x191   : > { %1589 = vrot.lane.b32.xlu0 %v1588_v60, %s1685_s10  ;;  %1594 = vrot.lane.b32.xlu1 %v1583_v56, %s1686_s12 }
 0x195   : > { %1599 = vrot.lane.b32.xlu0 %v1588_v60, %s1686_s12  ;;  %553 = vperm.xlu1 %1603, %v1831_v12   ;;  %v671_v12 = vld [vmem:[%s2081_s6 + $0x30] sm:$0xff]  ;;  %v1691_v60 = vmov 0.0   ;;  %s349_s12 = scalar_lea.vmem [#allocation3], %s1800_s25 }
 0x196   : > { %s1100_s21 = sshll.u32 %s349_s12, 4  ;;  %s2023_s21 = int_to_ptr.vmem [resolvable:$true] %s1100_s21 }
 0x197   : > { %s1621_s13 = scalar_lea.vmem %s2023_s21, 512  ;;  %p1628_p2 = scmp.lt.s32.totalorder %s2023_s21, %s1626_s18 }
 0x198   : > { %p1622_p13 = scmp.ne.s32.totalorder %s2023_s21, %s1621_s13  ;;  %p1629_p3 = scmp.lt.s32.totalorder %s1627_s19, %s1621_s13 }
 0x199   : > { %557 = vperm.xlu0 %1604, %v1826_v11   ;;  %561 = vperm.xlu1 %1603, %v1838_v14   ;;  %v672_v11 = vld [vmem:[%s2081_s6 + $0x38] sm:$0xff]  ;;  %v674_v14 = vld [vmem:[%s2081_s6 + $0x48] sm:$0xff] }
 0x19a   : > { %v1486_v17 = vpack.c.bf16 %v672_v11, %v671_v12  ;;  %v1490_v19 = vpack.c.bf16 %v674_v14, %v673_v18  ;;  %v844_v12 = vld [vmem:[%s2080_s5 + $0x10] sm:$0xff]  ;;  %v845_v11 = vld [vmem:[%s2080_s5 + $0x18] sm:$0xff]  ;;  %p1623_p0 = pnand %p1622_p13, %p1779_p6  ;;  %p1630_p4 = por %p1629_p3, %p1628_p2 }
 0x19c   : > { %1487 = vmatprep.subr.bf16.mxu0 %v1486_v17  ;;  %p1624_p1 = pneg %p1623_p0 }
 0x19d   : > { %565 = vperm.xlu1 %1603, %v1843_v15   ;;  %1489 = vmatpush3.bf16.msra.mxu0 %v1486_v17  ;;  %v1494_v15 = vpack.c.bf16 %v676_v21, %v675_v20  ;;  %v972_v17 = vld [vmem:[%s2082_s7] sm:$0xff] }
 0x19e   : > { %1491 = vmatprep.subr.bf16.mxu0 %v1490_v19  ;;  %p1631_p5 = pnand %p1630_p4, %p1624_p1 }
 0x1a1   : > { %1493 = vmatpush3.bf16.msra.mxu0 %v1490_v19 }
 0x1a2   : > { %1495 = vmatprep.subr.bf16.mxu0 %v1494_v15 }
 0x1a5   : > { %1497 = vmatpush3.bf16.msra.mxu0 %v1494_v15 }
 0x1a6   : > { %1499 = vmatprep.subr.bf16.mxu0 %v1498_v25 }
 0x1a9   : > { %1501 = vmatpush3.bf16.msra.mxu0 %v1498_v25 }
 0x1aa   : > { %1503 = vmatprep.subr.bf16.mxu0 %v1502_v46 }
 0x1ad   : > { %1505 = vmatpush3.bf16.msra.mxu0 %v1502_v46 }
 0x1ff   : > { %v1585_v26 = vpop.permute.xlu1 %1584 }
 0x200   : > { %v1587_v27 = vunpack.i.h.bf16 %v1585_v26  ;;  %v1586_v28 = vunpack.i.l.bf16 %v1585_v26 }
 0x202   : > { %v1442_v29 = vpack.c.bf16 %v1587_v27, %v1586_v28 }
 0x203   : > { %v1590_v30 = vpop.permute.xlu0 %1589  ;;  %v1595_v34 = vpop.permute.xlu1 %1594 }
 0x204   : > { %v1592_v31 = vunpack.i.h.bf16 %v1590_v30  ;;  %v1591_v32 = vunpack.i.l.bf16 %v1590_v30  ;;  %1444 = vmatprep.subr.msk.bf16.mxu1 %vm1847_vm2, %v1442_v29  ;;  %v1597_v35 = vunpack.i.h.bf16 %v1595_v34  ;;  %v1596_v36 = vunpack.i.l.bf16 %v1595_v34 }
 0x205   : > { %1447 = vmatpush3.bf16.msk.msra.mxu1 %vm1847_vm2, %v1442_v29 }
 0x206   : > { %v1448_v33 = vpack.c.bf16 %v1592_v31, %v1591_v32  ;;  %v1462_v39 = vpack.c.bf16 %v1597_v35, %v1596_v36 }
 0x207   : > { %v1600_v38 = vpop.permute.xlu0 %1599 }
 0x208   : > { %1450 = vmatprep.subr.msk.bf16.mxu1 %vm1847_vm2, %v1448_v33  ;;  %v1602_v40 = vunpack.i.h.bf16 %v1600_v38  ;;  %v1601_v41 = vunpack.i.l.bf16 %v1600_v38 }
 0x209   : > { %1453 = vmatpush3.bf16.msk.msra.mxu1 %vm1847_vm2, %v1448_v33 }
 0x20a   : > { %1455 = vmatprep.subr.bf16.mxu1 %v1887_v57  ;;  %v1468_v42 = vpack.c.bf16 %v1602_v40, %v1601_v41 }
 0x20d   : > { %1457 = vmatpush3.bf16.msra.mxu1 %v1887_v57 }
 0x20e   : > { %1459 = vmatprep.subr.bf16.mxu1 %v1890_v61 }
 0x211   : > { %1461 = vmatpush3.bf16.msra.mxu1 %v1890_v61 }
 0x212   : > { %1464 = vmatprep.subr.msk.bf16.mxu1 %vm1863_vm4, %v1462_v39 }
 0x214   : > { %v554_v47 = vpop.permute.xlu1 %553 }
 0x215   : > { %1467 = vmatpush3.bf16.msk.msra.mxu1 %vm1863_vm4, %v1462_v39 }
 0x216   : > { %1470 = vmatprep.subr.msk.bf16.mxu1 %vm1863_vm4, %v1468_v42 }
 0x218   : > { %v558_v48 = vpop.permute.xlu0 %557  ;;  %v562_v49 = vpop.permute.xlu1 %561 }
 0x219   : > { %1473 = vmatpush3.bf16.msk.msra.mxu1 %vm1863_vm4, %v1468_v42 }
 0x21a   : > { %1506 = vmatprep.subr.bf16.mxu1 %v1689_v59 }
 0x21c   : > { %1340 = vmatmul.mubr.msk.f32.vlgmr.msra.gmra.mrb[0].mxu1 %vm422_vm0, %v525_v22  ;;  %v566_v56 = vpop.permute.xlu1 %565 }
 0x21d   : > { %1342 = vmatprep.mubr.msk.f32.mxu1 %vm422_vm0, %v526_v43 }
 0x220   : > { %1343 = vmatmul.mubr.msk.f32.gmra.mrb[2].mxu1 %vm422_vm0, %v527_v44 }
 0x221   : > { %1391 = vmatprep.mubr.msk.f32.mxu1 %vm1690_vm5, %v1691_v60 }
 0x2ef   : > { %v1341_v50 = vpop.f32.mrb[0].mxu1 }
 0x2f0   : > { %v646_v51 = vpop.f32.mrb[1].mxu1  ;;  %v1985_v53 = vadd.f32 %v1341_v50, %v558_v48 }
 0x2f1   : > { %v1983_v52 = vadd.f32 %v646_v51, %v554_v47 }
 0x2f3   : > { %v1344_v54 = vpop.f32.mrb[2].mxu1  ;;  %1377 = vmatprep.mubr.f32.mxu0 %v1983_v52 }
 0x2f4   : > { %v656_v55 = vpop.f32.mrb[3].mxu1  ;;  %1378 = vmatmul.mubr.f32.vlgmr.msra.gmra.mrb[4].mxu0 %v1985_v53  ;;  %v1991_v58 = vadd.f32 %v1344_v54, %v566_v56 }
 0x2f5   : > { %v1989_v57 = vadd.f32 %v656_v55, %v562_v49 }
 0x2f7   : > { %1380 = vmatprep.mubr.f32.mxu0 %v1989_v57 }
 0x2f8   : > { %1381 = vmatmul.mubr.f32.gmra.mrb[6].mxu0 %v1991_v58 }
 0x3c7   : > { %v1379_v61 = vpop.f32.mrb[4].mxu0 }
 0x3c8   : > { %v747_v62 = vpop.f32.mrb[5].mxu0 }
 0x3c9   : > { %v1507_v63 = vpack.c.bf16 %v1379_v61, %v747_v62 }
 0x3cb   : > { %v1382_v0 = vpop.f32.mrb[6].mxu0  ;;  %1508 = vmatpush3.bf16.msra.mxu1 %v1507_v63 }
 0x3cc   : > { %v757_v1 = vpop.f32.mrb[7].mxu0  ;;  %1509 = vmatprep.subr.bf16.mxu1 %v1689_v59 }
 0x3cd   : > { %v1510_v2 = vpack.c.bf16 %v1382_v0, %v757_v1 }
 0x3cf   : > { %1511 = vmatpush3.bf16.msra.mxu1 %v1510_v2 }
 0x3d2   : > { %1392 = vmatmul.mubr.msk.f32.vlgmr.msra.gmra.mrb[4].mxu1 %vm767_vm6, %v766_v3 }
 0x3d3   : > { %1396 = vmatprep.mubr.msk.f32.mxu1 %vm846_vm7, %v842_v7 }
 0x4a5   : > { %v837_v9 = vpop.f32.mrb[4].mxu1 }
 0x4a6   : > { %v841_v10 = vmax.f32 %v837_v9, 0.0  ;;  %v1393_v13 = vpop.f32.mrb[5].mxu1 }
 0x4a8   : > { %1394 = vmatprep.subr.msk.mxu1 %vm859_vm8, %v841_v10 }
 0x4a9   : > { %1395 = vmatpush3.msk.msra.mxu1 %vm859_vm8, %v841_v10 }
 0x4aa   : > { %1397 = vmatmul.mubr.msk.f32.vlgmr.msra.gmra.mrb[6].mxu1 %vm846_vm7, %v843_v16  ;;  %1402 = vmatprep.subr.mxu1 %v972_v17 }
 0x4ab   : > { %1399 = vmatprep.mubr.msk.f32.mxu1 %vm846_vm7, %v844_v12  ;;  %1403 = vmatpush3.msra.mxu1 %v972_v17 }
 0x4ae   : > { %1400 = vmatmul.mubr.msk.f32.gmra.mrb[8].mxu1 %vm846_vm7, %v845_v11 }
 0x57d   : > { %v1398_v18 = vpop.f32.mrb[6].mxu1 }
 0x57e   : > { %v1207_v14 = vmul.f32 -1.442695, %v1398_v18  ;;  %v929_v19 = vpop.f32.mrb[7].mxu1 }
 0x57f   : > { %v1206_v20 = vmul.f32 -1.442695, %v929_v19 }
 0x580   : > { %1605 = vpow2.f32 %v1207_v14 }
 0x581   : > { %1607 = vpow2.f32 %v1206_v20  ;;  %v1401_v21 = vpop.f32.mrb[8].mxu1 }
 0x582   : > { %v1209_v15 = vmul.f32 -1.442695, %v1401_v21  ;;  %v939_v23 = vpop.f32.mrb[9].mxu1 }
 0x583   : > { %v1208_v24 = vmul.f32 -1.442695, %v939_v23 }
 0x584   : > { %1609 = vpow2.f32 %v1209_v15 }
 0x585   : > { %1611 = vpow2.f32 %v1208_v24 }
 0x58a   : > { %v1606_v25 = vpop.eup %1605 }
 0x58b   : > { %v1608_v26 = vpop.eup %1607  ;;  %v961_v27 = vadd.f32 1.0, %v1606_v25 }
 0x58c   : > { %v960_v28 = vadd.f32 1.0, %v1608_v26 }
 0x58e   : > { %v1610_v29 = vpop.eup %1609  ;;  %1613 = vrcp.f32 %v960_v28 }
 0x58f   : > { %v1612_v30 = vpop.eup %1611  ;;  %1615 = vrcp.f32 %v961_v27  ;;  %v963_v31 = vadd.f32 1.0, %v1610_v29 }
 0x590   : > { %v962_v32 = vadd.f32 1.0, %v1612_v30 }
 0x592   : > { %1617 = vrcp.f32 %v962_v32 }
 0x593   : > { %1619 = vrcp.f32 %v963_v31 }
 0x598   : > { %v1614_v33 = vpop.eup %1613 }
 0x599   : > { %v1616_v34 = vpop.eup %1615  ;;  %1404 = vmatprep.mubr.msk.f32.mxu1 %vm973_vm9, %v1614_v33 }
 0x59a   : > { %1405 = vmatmul.mubr.msk.f32.vlgmr.msra.gmra.mrb[10].mxu1 %vm973_vm9, %v1616_v34 }
 0x59c   : > { %v1618_v35 = vpop.eup %1617 }
 0x59d   : > { %v1620_v36 = vpop.eup %1619  ;;  %1407 = vmatprep.mubr.msk.f32.mxu1 %vm973_vm9, %v1618_v35 }
 0x59e   : > { %1408 = vmatmul.mubr.msk.f32.gmra.mrb[12].mxu1 %vm973_vm9, %v1620_v36 }
 0x66d   : > { %v1406_v38 = vpop.f32.mrb[10].mxu1 }
 0x66e   : > { %v1072_v39 = vmul.f32 %v1406_v38, %v1985_v53  ;;  %v1052_v40 = vpop.f32.mrb[11].mxu1 }
 0x66f   : > { %v1071_v41 = vmul.f32 %v1052_v40, %v1983_v52 }
 0x670   : > { %v1076_v42 = vadd.f32 %v1072_v39, %v1805_v5 }
 0x671   : > { %v1075_v22 = vadd.f32 %v1071_v41, %v1803_v4  ;;  %v1409_v43 = vpop.f32.mrb[12].mxu1 }
 0x672   : > { %v1080_v44 = vmax.f32 %v1076_v42, 0.0  ;;  %v1074_v37 = vmul.f32 %v1409_v43, %v1991_v58  ;;  %v1062_v45 = vpop.f32.mrb[13].mxu1 }
 0x673   : > { %v1079_v46 = vmax.f32 %v1075_v22, 0.0  ;;  %v1073_v47 = vmul.f32 %v1062_v45, %v1989_v57 }
 0x674   : > { %1084 = vst [vmem:[%s349_s12 + $0x8] sm:$0xff] %v1080_v44  ;;  %v1078_v48 = vadd.f32 %v1074_v37, %v1811_v8 }
 0x675   : > { %1083 = vst [vmem:[%s349_s12] sm:$0xff] %v1079_v46  ;;  %v1077_v4 = vadd.f32 %v1073_v47, %v1807_v6 }
 0x676   : > { %v1082_v5 = vmax.f32 %v1078_v48, 0.0 }
 0x677   : > { %v1081_v49 = vmax.f32 %v1077_v4, 0.0 }
 0x678   : > { %1086 = vst [vmem:[%s349_s12 + $0x18] sm:$0xff] %v1082_v5 }
 0x679   : > { %1085 = vst [vmem:[%s349_s12 + $0x10] sm:$0xff] %v1081_v49 }
 0x67a   : > { %1634 = shalt.err (!%p1631_p5)
}
 0x67b   : > { %s1635_s24 = scalar_lea.hbm %s2029_s26, 512  ;;  %s1639_s12 = scalar_lea.hbm %s2083_s8, 1024 }
 0x67c   : > { %p1636_p7 = scmp.ne.s32.totalorder %s2029_s26, %s1635_s24  ;;  %p1640_p12 = scmp.lt.u32.totalorder %s2029_s26, %s2083_s8 }
 0x67d   : > { %p1641_p13 = scmp.lt.u32.totalorder %s1639_s12, %s1635_s24  ;;  %p1643_p1 = scmp.lt.u32.totalorder %s1635_s24, %s2029_s26 }
 0x67e   : > { %p1637_p10 = pnand %p1636_p7, %p1779_p6 }
 0x67f   : > { %p1642_p0 = por %p1641_p13, %p1640_p12 }
 0x680   : > { %p1638_p11 = pneg %p1637_p10 }
 0x681   : > { %p1644_p2 = por %p1643_p1, %p1642_p0 }
 0x683   : > { %p1645_p3 = pnand %p1644_p2, %p1638_p11 }
 0x685   : > { %1648 = shalt.err (!%p1645_p3)
}
 0x686   : > { %s1693_s23 = smov 128   ;;  %s1694_s13 = smov 256  }
 0x687   : > { %s1695_s17 = smov 8  }
 0x688   : > { %1512 = dma.vmem_to_hbm [thread:$0]  (%p1779_p6), %s2023_s21, 512, %s2029_s26, %s2033_s9, %s1693_s23, %s1694_s13, %s1695_s17  }
 0x689 PF: > { %s1115_s18 = sand.u32 1, %s1671_s27   ;;  %p1515_p4 = pnand %p1170_p9, %p1783_p8 }
 0x68a   : > { %s1116_s19 = scalar_lea.sflag [#allocation4], %s1115_s18 }
 0x68b   : > { %1666 = dma.done.wait (!%p1515_p4), %s1116_s19, 512  }
 0x68c   : > { %1668 = vsyncadd (!%p1515_p4), %s1116_s19, 4294966784  ;;  %p18_p5 = scmp.ge.s32.totalorder %s1764_s11, 4   ;;  %s2090_s27 = smov %s1675_s28 }
 0x68d   : > { %s2091_s28 = smov %s1679_s29  ;;  %s2092_s29 = smov %s1777_s14 }
 0x68e   : > { %s2093_s30 = smov %s1764_s11  ;;  %20 = sbr.rel (!%p18_p5) target bundleno = 3 (0x3), region = 130 }
 0x695   :  { %1121 = vsyncpa [#allocation4], 1 }
 0x696   :  { %1123 = vsyncpa [#allocation4 + $0x1], 1 }

</bundles_post_ra>
